<compile_context>
chip_gen: v7x
topology: tpu7x:2x2x1
jax: 0.10.0
libtpu: 0.0.40
codegen_flags: <defaults>
</compile_context>

<pallas_src>
import functools

import jax
import jax.numpy as jnp
from jax import lax
from jax.experimental import pallas as pl
from jax.experimental.pallas import tpu as pltpu

_SQRT_HALF = 0.7071067811865476


def _round_up(x: int, m: int) -> int:
    return ((x + m - 1) // m) * m


def _vmem_usable_bytes() -> int:
    """Generation-aware usable VMEM (leaves headroom for compiler scratch)."""
    try:
        cap = int(pltpu.get_tpu_info().vmem_capacity_bytes)
    except Exception:
        cap = 64 * 1024 * 1024  # conservative (v7x-sized) fallback
    return max(32 * 1024 * 1024, int(cap * 0.85))


def _ln_gelu(y, g, bt, h_real, eps, approx_gelu):
    """LayerNorm affine + GELU on an f32 (rows, Hp) tile.

    Padded lanes of `y` are exactly zero (zero-padded weight columns and bias),
    so the one-pass lane sums below already equal the sums over the real H
    lanes.  Padded lanes of gamma/beta are zero, so padded output lanes are 0.
    """
    inv_h = jnp.float32(1.0 / h_real)
    s1 = jnp.sum(y, axis=-1, keepdims=True)
    s2 = jnp.sum(y * y, axis=-1, keepdims=True)
    mean = s1 * inv_h
    var = jnp.maximum(s2 * inv_h - mean * mean, 0.0)
    inv = lax.rsqrt(var + jnp.float32(eps))
    yn = (y - mean) * inv * g + bt
    if approx_gelu:
        return jax.nn.gelu(yn, approximate=True)
    return 0.5 * yn * (1.0 + lax.erf(yn * jnp.float32(_SQRT_HALF)))


def _resident_kernel(x_ref, wt_ref, b_ref, g_ref, beta_ref, o_ref, *,
                     h_real, eps, mm_dtype, n_sub, approx_gelu):
    # x_ref: (tm, Hp) native dtype; wt_ref: (Hp, Hp) mm_dtype (already (in,out));
    # b/g/beta: (1, Hp) f32; o_ref: (tm, Hp).
    w = wt_ref[...]
    b = b_ref[...].astype(jnp.float32)
    g = g_ref[...].astype(jnp.float32)
    bt = beta_ref[...].astype(jnp.float32)
    sub = x_ref.shape[0] // n_sub
    # Static unroll over row sub-chunks: lets the scheduler overlap the MXU of
    # sub-chunk j+1 with the VPU/EUP epilogue of sub-chunk j.
    for j in range(n_sub):
        rows = pl.ds(j * sub, sub)
        xs = x_ref[rows, :].astype(mm_dtype)  # in-kernel bf16 cast (free VPU filler)
        y = jnp.dot(xs, w, preferred_element_type=jnp.float32) + b
        o_ref[rows, :] = _ln_gelu(y, g, bt, h_real, eps, approx_gelu).astype(o_ref.dtype)


def _kstream_kernel(x_ref, wt_ref, b_ref, g_ref, beta_ref, o_ref, acc_ref, *,
                    h_real, eps, mm_dtype, approx_gelu):
    # Grid = (rows, K).  x_ref: (tm, tk); wt_ref: (tk, Hp); acc_ref: (tm, Hp) f32.
    k = pl.program_id(1)

    @pl.when(k == 0)
    def _():
        acc_ref[...] = jnp.zeros_like(acc_ref)

    acc_ref[...] += jnp.dot(x_ref[...].astype(mm_dtype), wt_ref[...],
                            preferred_element_type=jnp.float32)

    @pl.when(k == pl.num_programs(1) - 1)
    def _():
        y = acc_ref[...] + b_ref[...].astype(jnp.float32)
        g = g_ref[...].astype(jnp.float32)
        bt = beta_ref[...].astype(jnp.float32)
        o_ref[...] = _ln_gelu(y, g, bt, h_real, eps, approx_gelu).astype(o_ref.dtype)


def prepare_params(weight, bias, gamma, beta, *, use_bf16_matmul=True):
    """One-time parameter prep: transpose (out,in)->(in,out), lane-pad to a
    multiple of 128, cast the weight to the MXU dtype.  Hoist this out of the
    per-call path and reuse the result across calls."""
    H = weight.shape[0]
    Hp = _round_up(H, 128)
    mm_dtype = jnp.bfloat16 if use_bf16_matmul else jnp.float32
    wt = weight.T
    if Hp != H:
        wt = jnp.pad(wt, ((0, Hp - H), (0, Hp - H)))
        bias = jnp.pad(bias, (0, Hp - H))
        gamma = jnp.pad(gamma, (0, Hp - H))
        beta = jnp.pad(beta, (0, Hp - H))
    return dict(
        wt=wt.astype(mm_dtype),
        b=bias.reshape(1, Hp).astype(jnp.float32),
        g=gamma.reshape(1, Hp).astype(jnp.float32),
        beta=beta.reshape(1, Hp).astype(jnp.float32),
        h=H, hp=Hp, mm_dtype=mm_dtype,
    )


def feature_fusion(x, weight=None, bias=None, gamma=None, beta=None, *,
                   params=None, tm=None, tk=None, use_bf16_matmul=True,
                   eps=1e-5, approximate_gelu=False, k_stream=None,
                   out_dtype=None):
    """x: (B, S, H). weight: (H, H) in PyTorch (out, in) layout. Returns (B, S, H)."""
    B, S, H_in = x.shape
    if params is None:
        params = prepare_params(weight, bias, gamma, beta,
                                use_bf16_matmul=use_bf16_matmul)
    H, Hp, mm_dtype = params["h"], params["hp"], params["mm_dtype"]
    assert H == H_in, (H, H_in)
    M = B * S
    out_dtype = x.dtype if out_dtype is None else out_dtype

    x2 = x.reshape(M, H)
    if Hp != H:
        # Lane padding must be real zeros (padded x lanes meet zero weight rows,
        # but OOB garbage could contain NaN/Inf).  Rows are NEVER padded: the
        # grid uses a partial final block; Pallas masks the OOB writeback.
        x2 = jnp.pad(x2, ((0, 0), (0, Hp - H)))

    usable = _vmem_usable_bytes()
    x_item = jnp.dtype(x2.dtype).itemsize
    out_item = jnp.dtype(out_dtype).itemsize
    mm_item = jnp.dtype(mm_dtype).itemsize
    weight_bytes = Hp * Hp * mm_item
    if k_stream is None:
        # Stream K tiles when a resident weight would dominate VMEM (v7x, big H).
        k_stream = weight_bytes > 0.35 * usable

    def _clamp_tm(t):
        t = max(8, min(int(t), _round_up(M, 8)))
        return _round_up(t, 8)

    if not k_stream:
        tm_v = _clamp_tm(tm if tm is not None else (1024 if Hp <= 1024 else 512))

        def resident_budget(t):
            return (weight_bytes + 3 * Hp * 4          # resident weight + params (1 buf)
                    + 2 * t * Hp * x_item               # x tiles (double-buffered)
                    + 2 * t * Hp * out_item             # out tiles (double-buffered)
                    + 4 * t * Hp * 4                    # f32 intermediates
                    + (2 << 20))

        while tm_v > 8 and resident_budget(tm_v) > usable:
            tm_v = _clamp_tm(tm_v // 2)

        n_sub = 1
        for cand in (4, 2):
            if tm_v >= 128 * cand and tm_v % (8 * cand) == 0:
                n_sub = cand
                break

        grid = (pl.cdiv(M, tm_v),)
        dims = ("parallel",)
        kernel = functools.partial(_resident_kernel, h_real=H, eps=eps,
                                   mm_dtype=mm_dtype, n_sub=n_sub,
                                   approx_gelu=approximate_gelu)

        def vmem_limit_fn(single_buffer):
            extra = 0 if single_buffer else (weight_bytes + 3 * Hp * 4)
            return int(min(usable, max(32 << 20, resident_budget(tm_v) + extra)))

        def make_specs(single_buffer):
            const = dict(pipeline_mode=pl.Buffered(1)) if single_buffer else {}
            in_specs = [
                pl.BlockSpec((tm_v, Hp), lambda i: (i, 0)),            # x rows
                pl.BlockSpec((Hp, Hp), lambda i: (0, 0), **const),     # weight^T, resident
                pl.BlockSpec((1, Hp), lambda i: (0, 0), **const),      # Linear bias
                pl.BlockSpec((1, Hp), lambda i: (0, 0), **const),      # LN gamma
                pl.BlockSpec((1, Hp), lambda i: (0, 0), **const),      # LN beta
            ]
            out_specs = pl.BlockSpec((tm_v, Hp), lambda i: (i, 0))
            return in_specs, out_specs, ()
    else:
        if tk is None:
            tk_v = next(c for c in (1024, 512, 256, 128) if Hp % c == 0)
        else:
            tk_v = int(tk)
            assert Hp % tk_v == 0 and tk_v % 128 == 0, (Hp, tk_v)
        tm_v = _clamp_tm(tm if tm is not None else 512)

        def stream_budget(t):
            return (2 * tk_v * Hp * mm_item             # weight K tiles (double-buffered)
                    + 2 * t * tk_v * x_item              # x tiles (double-buffered)
                    + 2 * t * Hp * out_item              # out tiles (double-buffered)
                    + t * Hp * 4                         # f32 accumulator scratch
                    + 3 * t * Hp * 4                     # f32 epilogue temps
                    + 3 * Hp * 4
                    + (2 << 20))

        while tm_v > 8 and stream_budget(tm_v) > usable:
            tm_v = _clamp_tm(tm_v // 2)

        grid = (pl.cdiv(M, tm_v), Hp // tk_v)
        dims = ("parallel", "arbitrary")
        kernel = functools.partial(_kstream_kernel, h_real=H, eps=eps,
                                   mm_dtype=mm_dtype,
                                   approx_gelu=approximate_gelu)

        def vmem_limit_fn(single_buffer):
            return int(min(usable, max(32 << 20, stream_budget(tm_v))))

        def make_specs(single_buffer):
            const = dict(pipeline_mode=pl.Buffered(1)) if single_buffer else {}
            in_specs = [
                pl.BlockSpec((tm_v, tk_v), lambda i, k: (i, k)),        # x K tiles
                pl.BlockSpec((tk_v, Hp), lambda i, k: (k, 0)),          # weight^T K tiles
                pl.BlockSpec((1, Hp), lambda i, k: (0, 0), **const),
                pl.BlockSpec((1, Hp), lambda i, k: (0, 0), **const),
                pl.BlockSpec((1, Hp), lambda i, k: (0, 0), **const),
            ]
            out_specs = pl.BlockSpec((tm_v, Hp), lambda i, k: (i, 0))
            scratch = (pltpu.VMEM((tm_v, Hp), jnp.float32),)
            return in_specs, out_specs, scratch

    def run(single_buffer):
        in_specs, out_specs, scratch = make_specs(single_buffer)
        return pl.pallas_call(
            kernel,
            out_shape=jax.ShapeDtypeStruct((M, Hp), out_dtype),
            grid_spec=pltpu.PrefetchScalarGridSpec(
                num_scalar_prefetch=0,
                grid=grid,
                in_specs=in_specs,
                out_specs=out_specs,
                scratch_shapes=list(scratch),
            ),
            compiler_params=pltpu.CompilerParams(
                dimension_semantics=dims,
                vmem_limit_bytes=vmem_limit_fn(single_buffer),
            ),
        )(x2, params["wt"], params["b"], params["g"], params["beta"])

    try:
        out = run(single_buffer=True)
    except Exception:
        # Installed jax may not support BlockSpec pipeline_mode / Buffered(1);
        # fall back to default double-buffering of the grid-invariant operands.
        out = run(single_buffer=False)

    if Hp != H:
        out = out[:, :H]
    return out.reshape(B, S, H)


def reference(x, weight, bias, gamma, beta, eps=1e-5):
    y = jnp.einsum("bsh,oh->bso", x, weight) + bias
    mean = jnp.mean(y, axis=-1, keepdims=True)
    var = jnp.mean((y - mean) ** 2, axis=-1, keepdims=True)
    yn = (y - mean) * lax.rsqrt(var + eps) * gamma + beta
    return 0.5 * yn * (1.0 + lax.erf(yn * _SQRT_HALF))


if __name__ == "__main__":
    def make_inputs(B, S, H, key):
        kx, kw, kb = jax.random.split(key, 3)
        bound = 1.0 / jnp.sqrt(H)
        x = jax.random.normal(kx, (B, S, H), dtype=jnp.float32)
        weight = jax.random.uniform(kw, (H, H), jnp.float32, -bound, bound)  # (out, in)
        bias = jax.random.uniform(kb, (H,), jnp.float32, -bound, bound)
        gamma = jnp.ones((H,), jnp.float32)   # LayerNorm default init
        beta = jnp.zeros((H,), jnp.float32)
        return x, weight, bias, gamma, beta

    # Small shape implied by the module: batch=2, seq=8, hidden=32.
    B, S, H = 2, 8, 32
    x, weight, bias, gamma, beta = make_inputs(B, S, H, jax.random.PRNGKey(0))
    ref = reference(x, weight, bias, gamma, beta)

    # Exact-f32 resident-weight path (tight semantic check of Linear+LN+erf-GELU).
    out_f32 = jax.block_until_ready(
        feature_fusion(x, weight, bias, gamma, beta, use_bf16_matmul=False))
    assert out_f32.shape == (B, S, H)
    err_f32 = float(jnp.max(jnp.abs(out_f32 - ref)))
    assert err_f32 < 1e-4, err_f32

    # Default fast path: bf16 MXU operands (cast in-kernel), f32 accumulation.
    out_fast = jax.block_until_ready(feature_fusion(x, weight, bias, gamma, beta))
    assert out_fast.shape == (B, S, H)
    err_fast = float(jnp.max(jnp.abs(out_fast - ref)))
    assert err_fast < 5e-2, err_fast

    # Hoisted one-time parameter prep, reused across calls.
    prepped = prepare_params(weight, bias, gamma, beta, use_bf16_matmul=True)
    out_prep = jax.block_until_ready(feature_fusion(x, params=prepped))
    assert float(jnp.max(jnp.abs(out_prep - ref))) < 5e-2

    # K-streaming path (auto-selected for large H on small-VMEM chips); forced
    # here at a small shape with two K tiles to validate the accumulator path.
    B2, S2, H2 = 2, 8, 256
    x2, w2, b2, g2, bt2 = make_inputs(B2, S2, H2, jax.random.PRNGKey(1))
    ref2 = reference(x2, w2, b2, g2, bt2)
    out_ks = jax.block_until_ready(
        feature_fusion(x2, w2, b2, g2, bt2, use_bf16_matmul=False,
                       k_stream=True, tk=128))
    assert out_ks.shape == (B2, S2, H2)
    err_ks = float(jnp.max(jnp.abs(out_ks - ref2)))
    assert err_ks < 1e-4, err_ks

    print("KERNEL_OK")
</pallas_src>

<mosaic_0001>
module attributes {stable_mosaic.version = 11 : i64} {
  func.func @_resident_kernel(%arg0: i32, %arg1: memref<16x128xf32, #tpu.memory_space<vmem>>, %arg2: memref<128x128xf32, #tpu.memory_space<vmem>>, %arg3: memref<1x128xf32, #tpu.memory_space<vmem>>, %arg4: memref<1x128xf32, #tpu.memory_space<vmem>>, %arg5: memref<1x128xf32, #tpu.memory_space<vmem>>, %arg6: memref<16x128xf32, #tpu.memory_space<vmem>>) attributes {dimension_semantics = [#tpu.dimension_semantics<parallel>], iteration_bounds = array<i64: 1>, scalar_prefetch = 0 : i64, scratch_operands = 0 : i64, tpu.core_type = #tpu.core_type<tc>, window_params = [{transform_indices = @transform_0, window_bounds = array<i64: 16, 128>}, {pipeline_mode = #tpu.pipeline_mode<synchronous>, transform_indices = @transform_1, window_bounds = array<i64: 128, 128>}, {pipeline_mode = #tpu.pipeline_mode<synchronous>, transform_indices = @transform_2, window_bounds = array<i64: 1, 128>}, {pipeline_mode = #tpu.pipeline_mode<synchronous>, transform_indices = @transform_3, window_bounds = array<i64: 1, 128>}, {pipeline_mode = #tpu.pipeline_mode<synchronous>, transform_indices = @transform_4, window_bounds = array<i64: 1, 128>}, {transform_indices = @transform_5, window_bounds = array<i64: 16, 128>}]} {
    %c0 = arith.constant 0 : index
    %c0_0 = arith.constant 0 : index
    %0 = vector.load %arg2[%c0, %c0_0] : memref<128x128xf32, #tpu.memory_space<vmem>>, vector<128x128xf32>
    %c0_1 = arith.constant 0 : index
    %c0_2 = arith.constant 0 : index
    %1 = vector.load %arg3[%c0_1, %c0_2] : memref<1x128xf32, #tpu.memory_space<vmem>>, vector<1x128xf32>
    %c0_3 = arith.constant 0 : index
    %c0_4 = arith.constant 0 : index
    %2 = vector.load %arg4[%c0_3, %c0_4] : memref<1x128xf32, #tpu.memory_space<vmem>>, vector<1x128xf32>
    %c0_5 = arith.constant 0 : index
    %c0_6 = arith.constant 0 : index
    %3 = vector.load %arg5[%c0_5, %c0_6] : memref<1x128xf32, #tpu.memory_space<vmem>>, vector<1x128xf32>
    %c0_7 = arith.constant 0 : index
    %c0_8 = arith.constant 0 : index
    %4 = vector.load %arg1[%c0_7, %c0_8] : memref<16x128xf32, #tpu.memory_space<vmem>>, vector<16x128xf32>
    %cst = arith.constant dense<0.000000e+00> : vector<16x128xf32>
    %5 = tpu.matmul %4, %0, %cst {dimension_numbers = #tpu.dot_dimension_numbers<[1], [0], [0], [1], [0, 0, 1, 1], [], []>} : vector<16x128xf32>, vector<128x128xf32>, vector<16x128xf32> -> vector<16x128xf32>
    %6 = vector.broadcast %1 : vector<1x128xf32> to vector<16x128xf32>
    %7 = arith.addf %5, %6 : vector<16x128xf32>
    %cst_9 = arith.constant dense<0.000000e+00> : vector<16xf32>
    %8 = vector.multi_reduction <add>, %7, %cst_9 [1] : vector<16x128xf32> to vector<16xf32>
    %9 = vector.shape_cast %8 : vector<16xf32> to vector<16x1xf32>
    %10 = arith.mulf %7, %7 : vector<16x128xf32>
    %cst_10 = arith.constant dense<0.000000e+00> : vector<16xf32>
    %11 = vector.multi_reduction <add>, %10, %cst_10 [1] : vector<16x128xf32> to vector<16xf32>
    %12 = vector.shape_cast %11 : vector<16xf32> to vector<16x1xf32>
    %cst_11 = arith.constant 3.125000e-02 : f32
    %13 = vector.broadcast %cst_11 : f32 to vector<16x1xf32>
    %14 = arith.mulf %9, %13 : vector<16x1xf32>
    %cst_12 = arith.constant 3.125000e-02 : f32
    %15 = vector.broadcast %cst_12 : f32 to vector<16x1xf32>
    %16 = arith.mulf %12, %15 : vector<16x1xf32>
    %17 = arith.mulf %14, %14 : vector<16x1xf32>
    %18 = arith.subf %16, %17 : vector<16x1xf32>
    %cst_13 = arith.constant 0.000000e+00 : f32
    %19 = vector.broadcast %cst_13 : f32 to vector<16x1xf32>
    %20 = arith.maximumf %18, %19 : vector<16x1xf32>
    %cst_14 = arith.constant 9.99999974E-6 : f32
    %21 = vector.broadcast %cst_14 : f32 to vector<16x1xf32>
    %22 = arith.addf %20, %21 : vector<16x1xf32>
    %23 = math.rsqrt %22 : vector<16x1xf32>
    %24 = vector.broadcast %14 : vector<16x1xf32> to vector<16x128xf32>
    %25 = arith.subf %7, %24 : vector<16x128xf32>
    %26 = vector.broadcast %23 : vector<16x1xf32> to vector<16x128xf32>
    %27 = arith.mulf %25, %26 : vector<16x128xf32>
    %28 = vector.broadcast %2 : vector<1x128xf32> to vector<16x128xf32>
    %29 = arith.mulf %27, %28 : vector<16x128xf32>
    %30 = vector.broadcast %3 : vector<1x128xf32> to vector<16x128xf32>
    %31 = arith.addf %29, %30 : vector<16x128xf32>
    %cst_15 = arith.constant 5.000000e-01 : f32
    %32 = vector.broadcast %cst_15 : f32 to vector<16x128xf32>
    %33 = arith.mulf %32, %31 : vector<16x128xf32>
    %cst_16 = arith.constant 0.707106769 : f32
    %34 = vector.broadcast %cst_16 : f32 to vector<16x128xf32>
    %35 = arith.mulf %31, %34 : vector<16x128xf32>
    %36 = math.erf %35 : vector<16x128xf32>
    %cst_17 = arith.constant 1.000000e+00 : f32
    %37 = vector.broadcast %cst_17 : f32 to vector<16x128xf32>
    %38 = arith.addf %37, %36 : vector<16x128xf32>
    %39 = arith.mulf %33, %38 : vector<16x128xf32>
    %c0_18 = arith.constant 0 : index
    %c0_19 = arith.constant 0 : index
    %40 = vector.load %arg6[%c0_18, %c0_19] : memref<16x128xf32, #tpu.memory_space<vmem>>, vector<16x128xf32>
    tpu.vector_store %arg6[%c0_18, %c0_19], %39 {strides = array<i32>} : memref<16x128xf32, #tpu.memory_space<vmem>>, vector<16x128xf32>,
    return
  }
  func.func @transform_0(%arg0: i32) -> (i32, i32) {
    %c0_i32 = arith.constant 0 : i32
    %c0_i32_0 = arith.constant 0 : i32
    return %arg0, %c0_i32 : i32, i32
  }
  func.func @transform_1(%arg0: i32) -> (i32, i32) {
    %c0_i32 = arith.constant 0 : i32
    %c0_i32_0 = arith.constant 0 : i32
    %c0_i32_1 = arith.constant 0 : i32
    return %c0_i32, %c0_i32_0 : i32, i32
  }
  func.func @transform_2(%arg0: i32) -> (i32, i32) {
    %c0_i32 = arith.constant 0 : i32
    %c0_i32_0 = arith.constant 0 : i32
    %c0_i32_1 = arith.constant 0 : i32
    return %c0_i32, %c0_i32_0 : i32, i32
  }
  func.func @transform_3(%arg0: i32) -> (i32, i32) {
    %c0_i32 = arith.constant 0 : i32
    %c0_i32_0 = arith.constant 0 : i32
    %c0_i32_1 = arith.constant 0 : i32
    return %c0_i32, %c0_i32_0 : i32, i32
  }
  func.func @transform_4(%arg0: i32) -> (i32, i32) {
    %c0_i32 = arith.constant 0 : i32
    %c0_i32_0 = arith.constant 0 : i32
    %c0_i32_1 = arith.constant 0 : i32
    return %c0_i32, %c0_i32_0 : i32, i32
  }
  func.func @transform_5(%arg0: i32) -> (i32, i32) {
    %c0_i32 = arith.constant 0 : i32
    %c0_i32_0 = arith.constant 0 : i32
    return %arg0, %c0_i32 : i32, i32
  }
}

module attributes {stable_mosaic.version = 11 : i64} {
  func.func @_resident_kernel(%arg0: i32, %arg1: memref<16x128xf32, #tpu.memory_space<vmem>>, %arg2: memref<128x128xf32, #tpu.memory_space<vmem>>, %arg3: memref<1x128xf32, #tpu.memory_space<vmem>>, %arg4: memref<1x128xf32, #tpu.memory_space<vmem>>, %arg5: memref<1x128xf32, #tpu.memory_space<vmem>>, %arg6: memref<16x128xf32, #tpu.memory_space<vmem>>) attributes {dimension_semantics = [#tpu.dimension_semantics<parallel>], iteration_bounds = array<i64: 1>, scalar_prefetch = 0 : i64, scratch_operands = 0 : i64, tpu.core_type = #tpu.core_type<tc>, window_params = [{transform_indices = @transform_0, window_bounds = array<i64: 16, 128>}, {pipeline_mode = #tpu.pipeline_mode<synchronous>, transform_indices = @transform_1, window_bounds = array<i64: 128, 128>}, {pipeline_mode = #tpu.pipeline_mode<synchronous>, transform_indices = @transform_2, window_bounds = array<i64: 1, 128>}, {pipeline_mode = #tpu.pipeline_mode<synchronous>, transform_indices = @transform_3, window_bounds = array<i64: 1, 128>}, {pipeline_mode = #tpu.pipeline_mode<synchronous>, transform_indices = @transform_4, window_bounds = array<i64: 1, 128>}, {transform_indices = @transform_5, window_bounds = array<i64: 16, 128>}]} {
    %c0 = arith.constant 0 : index
    %c0_0 = arith.constant 0 : index
    %0 = vector.load %arg2[%c0, %c0_0] : memref<128x128xf32, #tpu.memory_space<vmem>>, vector<128x128xf32>
    %c0_1 = arith.constant 0 : index
    %c0_2 = arith.constant 0 : index
    %1 = vector.load %arg3[%c0_1, %c0_2] : memref<1x128xf32, #tpu.memory_space<vmem>>, vector<1x128xf32>
    %c0_3 = arith.constant 0 : index
    %c0_4 = arith.constant 0 : index
    %2 = vector.load %arg4[%c0_3, %c0_4] : memref<1x128xf32, #tpu.memory_space<vmem>>, vector<1x128xf32>
    %c0_5 = arith.constant 0 : index
    %c0_6 = arith.constant 0 : index
    %3 = vector.load %arg5[%c0_5, %c0_6] : memref<1x128xf32, #tpu.memory_space<vmem>>, vector<1x128xf32>
    %c0_7 = arith.constant 0 : index
    %c0_8 = arith.constant 0 : index
    %4 = vector.load %arg1[%c0_7, %c0_8] : memref<16x128xf32, #tpu.memory_space<vmem>>, vector<16x128xf32>
    %cst = arith.constant dense<0.000000e+00> : vector<16x128xf32>
    %5 = tpu.matmul %4, %0, %cst {dimension_numbers = #tpu.dot_dimension_numbers<[1], [0], [0], [1], [0, 0, 1, 1], [], []>} : vector<16x128xf32>, vector<128x128xf32>, vector<16x128xf32> -> vector<16x128xf32>
    %6 = vector.broadcast %1 : vector<1x128xf32> to vector<16x128xf32>
    %7 = arith.addf %5, %6 : vector<16x128xf32>
    %cst_9 = arith.constant dense<0.000000e+00> : vector<16xf32>
    %8 = vector.multi_reduction <add>, %7, %cst_9 [1] : vector<16x128xf32> to vector<16xf32>
    %9 = vector.shape_cast %8 : vector<16xf32> to vector<16x1xf32>
    %10 = arith.mulf %7, %7 : vector<16x128xf32>
    %cst_10 = arith.constant dense<0.000000e+00> : vector<16xf32>
    %11 = vector.multi_reduction <add>, %10, %cst_10 [1] : vector<16x128xf32> to vector<16xf32>
    %12 = vector.shape_cast %11 : vector<16xf32> to vector<16x1xf32>
    %cst_11 = arith.constant 3.125000e-02 : f32
    %13 = vector.broadcast %cst_11 : f32 to vector<16x1xf32>
    %14 = arith.mulf %9, %13 : vector<16x1xf32>
    %cst_12 = arith.constant 3.125000e-02 : f32
    %15 = vector.broadcast %cst_12 : f32 to vector<16x1xf32>
    %16 = arith.mulf %12, %15 : vector<16x1xf32>
    %17 = arith.mulf %14, %14 : vector<16x1xf32>
    %18 = arith.subf %16, %17 : vector<16x1xf32>
    %cst_13 = arith.constant 0.000000e+00 : f32
    %19 = vector.broadcast %cst_13 : f32 to vector<16x1xf32>
    %20 = arith.maximumf %18, %19 : vector<16x1xf32>
    %cst_14 = arith.constant 9.99999974E-6 : f32
    %21 = vector.broadcast %cst_14 : f32 to vector<16x1xf32>
    %22 = arith.addf %20, %21 : vector<16x1xf32>
    %23 = math.rsqrt %22 : vector<16x1xf32>
    %24 = vector.broadcast %14 : vector<16x1xf32> to vector<16x128xf32>
    %25 = arith.subf %7, %24 : vector<16x128xf32>
    %26 = vector.broadcast %23 : vector<16x1xf32> to vector<16x128xf32>
    %27 = arith.mulf %25, %26 : vector<16x128xf32>
    %28 = vector.broadcast %2 : vector<1x128xf32> to vector<16x128xf32>
    %29 = arith.mulf %27, %28 : vector<16x128xf32>
    %30 = vector.broadcast %3 : vector<1x128xf32> to vector<16x128xf32>
    %31 = arith.addf %29, %30 : vector<16x128xf32>
    %cst_15 = arith.constant 5.000000e-01 : f32
    %32 = vector.broadcast %cst_15 : f32 to vector<16x128xf32>
    %33 = arith.mulf %32, %31 : vector<16x128xf32>
    %cst_16 = arith.constant 0.707106769 : f32
    %34 = vector.broadcast %cst_16 : f32 to vector<16x128xf32>
    %35 = arith.mulf %31, %34 : vector<16x128xf32>
    %36 = math.erf %35 : vector<16x128xf32>
    %cst_17 = arith.constant 1.000000e+00 : f32
    %37 = vector.broadcast %cst_17 : f32 to vector<16x128xf32>
    %38 = arith.addf %37, %36 : vector<16x128xf32>
    %39 = arith.mulf %33, %38 : vector<16x128xf32>
    %c0_18 = arith.constant 0 : index
    %c0_19 = arith.constant 0 : index
    %40 = vector.load %arg6[%c0_18, %c0_19] : memref<16x128xf32, #tpu.memory_space<vmem>>, vector<16x128xf32>
    tpu.vector_store %arg6[%c0_18, %c0_19], %39 {strides = array<i32>} : memref<16x128xf32, #tpu.memory_space<vmem>>, vector<16x128xf32>,
    return
  }
  func.func @transform_0(%arg0: i32) -> (i32, i32) {
    %c0_i32 = arith.constant 0 : i32
    %c0_i32_0 = arith.constant 0 : i32
    return %arg0, %c0_i32 : i32, i32
  }
  func.func @transform_1(%arg0: i32) -> (i32, i32) {
    %c0_i32 = arith.constant 0 : i32
    %c0_i32_0 = arith.constant 0 : i32
    %c0_i32_1 = arith.constant 0 : i32
    return %c0_i32, %c0_i32_0 : i32, i32
  }
  func.func @transform_2(%arg0: i32) -> (i32, i32) {
    %c0_i32 = arith.constant 0 : i32
    %c0_i32_0 = arith.constant 0 : i32
    %c0_i32_1 = arith.constant 0 : i32
    return %c0_i32, %c0_i32_0 : i32, i32
  }
  func.func @transform_3(%arg0: i32) -> (i32, i32) {
    %c0_i32 = arith.constant 0 : i32
    %c0_i32_0 = arith.constant 0 : i32
    %c0_i32_1 = arith.constant 0 : i32
    return %c0_i32, %c0_i32_0 : i32, i32
  }
  func.func @transform_4(%arg0: i32) -> (i32, i32) {
    %c0_i32 = arith.constant 0 : i32
    %c0_i32_0 = arith.constant 0 : i32
    %c0_i32_1 = arith.constant 0 : i32
    return %c0_i32, %c0_i32_0 : i32, i32
  }
  func.func @transform_5(%arg0: i32) -> (i32, i32) {
    %c0_i32 = arith.constant 0 : i32
    %c0_i32_0 = arith.constant 0 : i32
    return %arg0, %c0_i32 : i32, i32
  }
}

</mosaic_0001>

<bundles_post_ra>
// kernel: tpu_custom_call.1
= control target key start
LH: loop header
LB: loop body
LE: loop exit
PB: predicated region body
PF: predicated region fallthrough
CT: control target
= control target key end

     0   :  { %10 = vsyncpa [#allocation3], 0  ;;  %s487_s0 = inlined_call_operand.hbm [shape: f32[16,128], index: 0, kind: input, shape index: {}]   ;;  %s488_s1 = inlined_call_operand.hbm [shape: f32[128,128], index: 1, kind: input, shape index: {}]   ;;  %s489_s2 = inlined_call_operand.vmem [shape: f32[1,128], index: 2, kind: input, shape index: {}]   ;;  %s490_s3 = inlined_call_operand.vmem [shape: f32[1,128], index: 3, kind: input, shape index: {}]   ;;  %s491_s4 = inlined_call_operand.vmem [shape: f32[1,128], index: 4, kind: input, shape index: {}]   ;;  %s492_s5 = inlined_call_operand.hbm [shape: f32[16,128], index: 5, kind: output, shape index: {}]  }
   0x1   :  { %11 = vsyncpa [#allocation6], 0 }
   0x2   :  { %12 = vsyncpa [#allocation4], 0  ;;  %s398_s18 = smov [#allocation2]   ;;  %s326_s22 = scalar_lea.hbm %s487_s0, 256 }
   0x3   :  { %s18_s19 = sshll.u32 %s398_s18, 4  ;;  %p327_p0 = scmp.ne.s32.totalorder %s487_s0, %s326_s22  ;;  %s19_s19 = int_to_ptr.vmem [resolvable:$true] %s18_s19 }
   0x4   :  { %p330_p1 = scmp.lt.u32.totalorder %s326_s22, %s487_s0 }
   0x6   :  { %p332_p2 = pnand %p330_p1, %p327_p0 }
   0x8   :  { %335 = shalt.err (!%p332_p2)
}
   0x9   :  { %s336_s27 = scalar_lea.vmem %s19_s19, 256  ;;  %p341_p4 = scmp.lt.s32.totalorder %s19_s19, %s19_s19 }
   0xa   :  { %p337_p3 = scmp.ne.s32.totalorder %s19_s19, %s336_s27  ;;  %p342_p5 = scmp.lt.s32.totalorder %s336_s27, %s336_s27 }
   0xc   :  { %p343_p6 = por %p342_p5, %p341_p4 }
   0xe   :  { %p344_p7 = pnand %p343_p6, %p337_p3 }
  0x10   :  { %347 = shalt.err (!%p344_p7)
}
  0x11   :  { %s399_s28 = smov 128   ;;  %s400_s29 = smov 8  }
  0x12   :  { %24 = dma.hbm_to_vmem [thread:$0]  %s487_s0, 256, %s19_s19, [#allocation3], %s399_s28, %s399_s28, %s400_s29  }
  0x13   :  { %s401_s7 = smov [#allocation5]   ;;  %s348_s11 = scalar_lea.hbm %s488_s1, 2048 }
  0x14   :  { %s30_s8 = sshll.u32 %s401_s7, 4  ;;  %p349_p8 = scmp.ne.s32.totalorder %s488_s1, %s348_s11  ;;  %s31_s8 = int_to_ptr.vmem [resolvable:$true] %s30_s8 }
  0x15   :  { %p352_p9 = scmp.lt.u32.totalorder %s348_s11, %s488_s1 }
  0x17   :  { %p354_p10 = pnand %p352_p9, %p349_p8 }
  0x19   :  { %357 = shalt.err (!%p354_p10)
}
  0x1a   :  { %s358_s16 = scalar_lea.vmem %s31_s8, 2048  ;;  %p363_p12 = scmp.lt.s32.totalorder %s31_s8, %s31_s8 }
  0x1b   :  { %p359_p11 = scmp.ne.s32.totalorder %s31_s8, %s358_s16  ;;  %p364_p13 = scmp.lt.s32.totalorder %s358_s16, %s358_s16 }
  0x1d   :  { %p365_p0 = por %p364_p13, %p363_p12 }
  0x1f   :  { %p366_p1 = pnand %p365_p0, %p359_p11 }
  0x21   :  { %369 = shalt.err (!%p366_p1)
}
  0x22   :  { %36 = dma.hbm_to_vmem [thread:$0]  %s488_s1, 2048, %s31_s8, [#allocation6], %s399_s28, %s399_s28, %s400_s29  }
  0x23   :  { %392 = dma.done.wait [#allocation3], 256  }
  0x24   :  { %393 = vsyncadd [#allocation3], 4294967040 }
  0x25   :  { %394 = dma.done.wait [#allocation6], 2048  }
  0x26   :  { %395 = vsyncadd [#allocation6], 4294965248  ;;  %v49_v0 = vld [vmem:[#allocation5] sm:$0xff]  ;;  %v50_v1 = vld [vmem:[#allocation5 + $0x8] sm:$0xff] }
  0x27   :  { %v51_v2 = vld [vmem:[#allocation5 + $0x10] sm:$0xff]  ;;  %v281_v3 = vpack.c.bf16 %v50_v1, %v49_v0  ;;  %v52_v4 = vld [vmem:[#allocation5 + $0x18] sm:$0xff]  ;;  %v53_v6 = vld [vmem:[#allocation5 + $0x20] sm:$0xff] }
  0x28   :  { %v285_v5 = vpack.c.bf16 %v52_v4, %v51_v2  ;;  %v54_v7 = vld [vmem:[#allocation5 + $0x28] sm:$0xff]  ;;  %v68_v9 = vld [vmem:[#allocation2] sm:$0xff]  ;;  %v56_v11 = vld [vmem:[#allocation5 + $0x38] sm:$0xff] }
  0x29   :  { %282 = vmatprep.subr.bf16.mxu0 %v281_v3  ;;  %v289_v8 = vpack.c.bf16 %v54_v7, %v53_v6  ;;  %v55_v10 = vld [vmem:[#allocation5 + $0x30] sm:$0xff]  ;;  %278 = vmatprep.mubr.f32.mxu0 %v68_v9  ;;  %v57_v13 = vld [vmem:[#allocation5 + $0x40] sm:$0xff]  ;;  %v58_v14 = vld [vmem:[#allocation5 + $0x48] sm:$0xff] }
  0x2a   :  { %284 = vmatpush3.bf16.msra.mxu0 %v281_v3  ;;  %v293_v12 = vpack.c.bf16 %v56_v11, %v55_v10  ;;  %v297_v15 = vpack.c.bf16 %v58_v14, %v57_v13  ;;  %v59_v16 = vld [vmem:[#allocation5 + $0x50] sm:$0xff]  ;;  %v60_v17 = vld [vmem:[#allocation5 + $0x58] sm:$0xff]  ;;  %v61_v19 = vld [vmem:[#allocation5 + $0x60] sm:$0xff] }
  0x2b   :  { %286 = vmatprep.subr.bf16.mxu0 %v285_v5  ;;  %v301_v18 = vpack.c.bf16 %v60_v17, %v59_v16  ;;  %v62_v20 = vld [vmem:[#allocation5 + $0x68] sm:$0xff]  ;;  %v63_v22 = vld [vmem:[#allocation5 + $0x70] sm:$0xff]  ;;  %v64_v23 = vld [vmem:[#allocation5 + $0x78] sm:$0xff] }
  0x2c   :  { %v305_v21 = vpack.c.bf16 %v62_v20, %v61_v19  ;;  %v309_v24 = vpack.c.bf16 %v64_v23, %v63_v22  ;;  %v69_v25 = vld [vmem:[#allocation2 + $0x8] sm:$0xff]  ;;  %v225_v26 = vld [vmem:[%s489_s2] ss:$0 sm:$0xff] }
  0x2d   :  { %v226_v51 = vld [vmem:[%s490_s3] ss:$0 sm:$0xff]  ;;  %s402_s3 = smov [#allocation7]  }
  0x2e   :  { %288 = vmatpush3.bf16.msra.mxu0 %v285_v5  ;;  %v227_v53 = vld [vmem:[%s491_s4] ss:$0 sm:$0xff]  ;;  %s212_s22 = sshll.u32 %s402_s3, 4  ;;  %s213_s22 = int_to_ptr.vmem [resolvable:$true] %s212_s22 }
  0x2f   :  { %290 = vmatprep.subr.bf16.mxu0 %v289_v8  ;;  %s370_s4 = scalar_lea.vmem %s213_s22, 256  ;;  %p375_p3 = scmp.lt.s32.totalorder %s213_s22, %s213_s22 }
  0x30   :  { %p371_p2 = scmp.ne.s32.totalorder %s213_s22, %s370_s4  ;;  %p376_p4 = scmp.lt.s32.totalorder %s370_s4, %s370_s4 }
  0x32   :  { %292 = vmatpush3.bf16.msra.mxu0 %v289_v8  ;;  %p377_p5 = por %p376_p4, %p375_p3 }
  0x33   :  { %294 = vmatprep.subr.bf16.mxu0 %v293_v12 }
  0x34   :  { %p378_p6 = pnand %p377_p5, %p371_p2 }
  0x36   :  { %296 = vmatpush3.bf16.msra.mxu0 %v293_v12 }
  0x37   :  { %298 = vmatprep.subr.bf16.mxu0 %v297_v15 }
  0x3a   :  { %300 = vmatpush3.bf16.msra.mxu0 %v297_v15 }
  0x3b   :  { %302 = vmatprep.subr.bf16.mxu0 %v301_v18 }
  0x3e   :  { %304 = vmatpush3.bf16.msra.mxu0 %v301_v18 }
  0x3f   :  { %306 = vmatprep.subr.bf16.mxu0 %v305_v21 }
  0x42   :  { %308 = vmatpush3.bf16.msra.mxu0 %v305_v21 }
  0x43   :  { %310 = vmatprep.subr.bf16.mxu0 %v309_v24 }
  0x46   :  { %312 = vmatpush3.bf16.msra.mxu0 %v309_v24 }
  0x49   :  { %279 = vmatmul.mubr.f32.vlgmr.msra.gmra.mrb[0].mxu0 %v69_v25 }
 0x11c   :  { %v280_v27 = vpop.f32.mrb[0].mxu0 }
 0x11d   :  { %v142_v28 = vpop.f32.mrb[1].mxu0  ;;  %v148_v30 = vadd.f32 %v280_v27, %v225_v26 }
 0x11e   :  { %v143_v29 = vadd.f32 %v225_v26, %v142_v28 }
 0x11f   :  { %v156_v32 = vmul.f32 %v148_v30, %v148_v30 }
 0x120   :  { %151 = vadd.xlane.f32.xlu0 %v143_v29  ;;  %v155_v31 = vmul.f32 %v143_v29, %v143_v29 }
 0x122   :  { %157 = vadd.xlane.f32.xlu1 %v155_v31 }
 0x124   :  { %153 = vadd.xlane.f32.xlu0 %v148_v30 }
 0x126   :  { %159 = vadd.xlane.f32.xlu1 %v156_v32 }
 0x1ad   :  { %v152_v33 = vpop.xlane.xlu0 %151 }
 0x1ae   :  { %v161_v34 = vmul.f32 0.03125, %v152_v33 }
 0x1af   :  { %v158_v35 = vpop.xlane.xlu1 %157 }
 0x1b0   :  { %v165_v36 = vmul.f32 %v161_v34, %v161_v34  ;;  %v163_v37 = vmul.f32 0.03125, %v158_v35  ;;  %v175_v49 = vsub.f32 %v143_v29, %v161_v34 }
 0x1b1   :  { %v154_v38 = vpop.xlane.xlu0 %153 }
 0x1b2   :  { %v167_v39 = vsub.f32 %v163_v37, %v165_v36  ;;  %v162_v40 = vmul.f32 0.03125, %v154_v38 }
 0x1b3   :  { %v160_v41 = vpop.xlane.xlu1 %159 }
 0x1b4   :  { %v169_v42 = vmax.f32 %v167_v39, 0.0  ;;  %v166_v43 = vmul.f32 %v162_v40, %v162_v40  ;;  %v164_v44 = vmul.f32 0.03125, %v160_v41  ;;  %v176_v54 = vsub.f32 %v148_v30, %v162_v40 }
 0x1b6   :  { %v171_v45 = vadd.f32 1e-05, %v169_v42  ;;  %v168_v46 = vsub.f32 %v164_v44, %v166_v43 }
 0x1b8   :  { %318 = vrsqrt.f32 %v171_v45  ;;  %v170_v47 = vmax.f32 %v168_v46, 0.0 }
 0x1ba   :  { %v172_v48 = vadd.f32 1e-05, %v170_v47 }
 0x1bc   :  { %320 = vrsqrt.f32 %v172_v48 }
 0x1c2   :  { %v319_v50 = vpop.eup %318 }
 0x1c3   :  { %v177_v52 = vmul.f32 %v319_v50, %v175_v49 }
 0x1c5   :  { %v185_v55 = vmul.f32 %v226_v51, %v177_v52 }
 0x1c6   :  { %v321_v56 = vpop.eup %320 }
 0x1c7   :  { %v178_v57 = vmul.f32 %v321_v56, %v176_v54  ;;  %v193_v58 = vadd.f32 %v227_v53, %v185_v55 }
 0x1c9   :  { %v186_v59 = vmul.f32 %v226_v51, %v178_v57  ;;  %v197_v60 = vmul.f32 0.70710677, %v193_v58  ;;  %v195_v0 = vmul.f32 0.5, %v193_v58 }
 0x1cb   :  { %v194_v61 = vadd.f32 %v227_v53, %v186_v59  ;;  %322 = verf.f32 %v197_v60 }
 0x1cd   :  { %v198_v62 = vmul.f32 0.70710677, %v194_v61  ;;  %v196_v4 = vmul.f32 0.5, %v194_v61 }
 0x1cf   :  { %324 = verf.f32 %v198_v62 }
 0x1d5   :  { %v323_v63 = vpop.eup %322 }
 0x1d6   :  { %v201_v1 = vadd.f32 1.0, %v323_v63 }
 0x1d8   :  { %v203_v2 = vmul.f32 %v201_v1, %v195_v0 }
 0x1d9   :  { %v325_v3 = vpop.eup %324 }
 0x1da   :  { %v202_v5 = vadd.f32 1.0, %v325_v3  ;;  %205 = vst [vmem:[#allocation7] sm:$0xff] %v203_v2 }
 0x1dc   :  { %v204_v6 = vmul.f32 %v202_v5, %v196_v4 }
 0x1de   :  { %206 = vst [vmem:[#allocation7 + $0x8] sm:$0xff] %v204_v6 }
 0x1df   :  { %381 = shalt.err (!%p378_p6)
}
 0x1e0   :  { %s382_s25 = scalar_lea.hbm %s492_s5, 256 }
 0x1e1   :  { %p383_p7 = scmp.ne.s32.totalorder %s492_s5, %s382_s25  ;;  %p386_p8 = scmp.lt.u32.totalorder %s382_s25, %s492_s5 }
 0x1e3   :  { %p388_p9 = pnand %p386_p8, %p383_p7 }
 0x1e5   :  { %391 = shalt.err (!%p388_p9)
}
 0x1e6   :  { %218 = dma.vmem_to_hbm [thread:$0]  %s213_s22, 256, %s492_s5, [#allocation4], %s399_s28, %s399_s28, %s400_s29  }
 0x1e7   :  { %396 = dma.done.wait [#allocation4], 256  }
 0x1e8   :  { %397 = vsyncadd [#allocation4], 4294967040 }
 0x1e9   :  { %222 = vsyncpa [#allocation3], 1 }
 0x1ea   :  { %223 = vsyncpa [#allocation6], 1 }
 0x1eb   :  { %224 = vsyncpa [#allocation4], 1 }

// kernel: tpu_custom_call.1
= control target key start
LH: loop header
LB: loop body
LE: loop exit
PB: predicated region body
PF: predicated region fallthrough
CT: control target
= control target key end

     0   :  { %10 = vsyncpa [#allocation3], 0  ;;  %s487_s0 = inlined_call_operand.hbm [shape: f32[16,128], index: 0, kind: input, shape index: {}]   ;;  %s488_s1 = inlined_call_operand.hbm [shape: f32[128,128], index: 1, kind: input, shape index: {}]   ;;  %s489_s2 = inlined_call_operand.vmem [shape: f32[1,128], index: 2, kind: input, shape index: {}]   ;;  %s490_s3 = inlined_call_operand.vmem [shape: f32[1,128], index: 3, kind: input, shape index: {}]   ;;  %s491_s4 = inlined_call_operand.vmem [shape: f32[1,128], index: 4, kind: input, shape index: {}]   ;;  %s492_s5 = inlined_call_operand.hbm [shape: f32[16,128], index: 5, kind: output, shape index: {}]  }
   0x1   :  { %11 = vsyncpa [#allocation6], 0 }
   0x2   :  { %12 = vsyncpa [#allocation4], 0  ;;  %s398_s18 = smov [#allocation2]   ;;  %s326_s22 = scalar_lea.hbm %s487_s0, 256 }
   0x3   :  { %s18_s19 = sshll.u32 %s398_s18, 4  ;;  %p327_p0 = scmp.ne.s32.totalorder %s487_s0, %s326_s22  ;;  %s19_s19 = int_to_ptr.vmem [resolvable:$true] %s18_s19 }
   0x4   :  { %p330_p1 = scmp.lt.u32.totalorder %s326_s22, %s487_s0 }
   0x6   :  { %p332_p2 = pnand %p330_p1, %p327_p0 }
   0x8   :  { %335 = shalt.err (!%p332_p2)
}
   0x9   :  { %s336_s27 = scalar_lea.vmem %s19_s19, 256  ;;  %p341_p4 = scmp.lt.s32.totalorder %s19_s19, %s19_s19 }
   0xa   :  { %p337_p3 = scmp.ne.s32.totalorder %s19_s19, %s336_s27  ;;  %p342_p5 = scmp.lt.s32.totalorder %s336_s27, %s336_s27 }
   0xc   :  { %p343_p6 = por %p342_p5, %p341_p4 }
   0xe   :  { %p344_p7 = pnand %p343_p6, %p337_p3 }
  0x10   :  { %347 = shalt.err (!%p344_p7)
}
  0x11   :  { %s399_s28 = smov 128   ;;  %s400_s29 = smov 8  }
  0x12   :  { %24 = dma.hbm_to_vmem [thread:$0]  %s487_s0, 256, %s19_s19, [#allocation3], %s399_s28, %s399_s28, %s400_s29  }
  0x13   :  { %s401_s7 = smov [#allocation5]   ;;  %s348_s11 = scalar_lea.hbm %s488_s1, 2048 }
  0x14   :  { %s30_s8 = sshll.u32 %s401_s7, 4  ;;  %p349_p8 = scmp.ne.s32.totalorder %s488_s1, %s348_s11  ;;  %s31_s8 = int_to_ptr.vmem [resolvable:$true] %s30_s8 }
  0x15   :  { %p352_p9 = scmp.lt.u32.totalorder %s348_s11, %s488_s1 }
  0x17   :  { %p354_p10 = pnand %p352_p9, %p349_p8 }
  0x19   :  { %357 = shalt.err (!%p354_p10)
}
  0x1a   :  { %s358_s16 = scalar_lea.vmem %s31_s8, 2048  ;;  %p363_p12 = scmp.lt.s32.totalorder %s31_s8, %s31_s8 }
  0x1b   :  { %p359_p11 = scmp.ne.s32.totalorder %s31_s8, %s358_s16  ;;  %p364_p13 = scmp.lt.s32.totalorder %s358_s16, %s358_s16 }
  0x1d   :  { %p365_p0 = por %p364_p13, %p363_p12 }
  0x1f   :  { %p366_p1 = pnand %p365_p0, %p359_p11 }
  0x21   :  { %369 = shalt.err (!%p366_p1)
}
  0x22   :  { %36 = dma.hbm_to_vmem [thread:$0]  %s488_s1, 2048, %s31_s8, [#allocation6], %s399_s28, %s399_s28, %s400_s29  }
  0x23   :  { %392 = dma.done.wait [#allocation3], 256  }
  0x24   :  { %393 = vsyncadd [#allocation3], 4294967040 }
  0x25   :  { %394 = dma.done.wait [#allocation6], 2048  }
  0x26   :  { %395 = vsyncadd [#allocation6], 4294965248  ;;  %v49_v0 = vld [vmem:[#allocation5] sm:$0xff]  ;;  %v50_v1 = vld [vmem:[#allocation5 + $0x8] sm:$0xff] }
  0x27   :  { %v51_v2 = vld [vmem:[#allocation5 + $0x10] sm:$0xff]  ;;  %v281_v3 = vpack.c.bf16 %v50_v1, %v49_v0  ;;  %v52_v4 = vld [vmem:[#allocation5 + $0x18] sm:$0xff]  ;;  %v53_v6 = vld [vmem:[#allocation5 + $0x20] sm:$0xff] }
  0x28   :  { %v285_v5 = vpack.c.bf16 %v52_v4, %v51_v2  ;;  %v54_v7 = vld [vmem:[#allocation5 + $0x28] sm:$0xff]  ;;  %v68_v9 = vld [vmem:[#allocation2] sm:$0xff]  ;;  %v56_v11 = vld [vmem:[#allocation5 + $0x38] sm:$0xff] }
  0x29   :  { %282 = vmatprep.subr.bf16.mxu0 %v281_v3  ;;  %v289_v8 = vpack.c.bf16 %v54_v7, %v53_v6  ;;  %v55_v10 = vld [vmem:[#allocation5 + $0x30] sm:$0xff]  ;;  %278 = vmatprep.mubr.f32.mxu0 %v68_v9  ;;  %v57_v13 = vld [vmem:[#allocation5 + $0x40] sm:$0xff]  ;;  %v58_v14 = vld [vmem:[#allocation5 + $0x48] sm:$0xff] }
  0x2a   :  { %284 = vmatpush3.bf16.msra.mxu0 %v281_v3  ;;  %v293_v12 = vpack.c.bf16 %v56_v11, %v55_v10  ;;  %v297_v15 = vpack.c.bf16 %v58_v14, %v57_v13  ;;  %v59_v16 = vld [vmem:[#allocation5 + $0x50] sm:$0xff]  ;;  %v60_v17 = vld [vmem:[#allocation5 + $0x58] sm:$0xff]  ;;  %v61_v19 = vld [vmem:[#allocation5 + $0x60] sm:$0xff] }
  0x2b   :  { %286 = vmatprep.subr.bf16.mxu0 %v285_v5  ;;  %v301_v18 = vpack.c.bf16 %v60_v17, %v59_v16  ;;  %v62_v20 = vld [vmem:[#allocation5 + $0x68] sm:$0xff]  ;;  %v63_v22 = vld [vmem:[#allocation5 + $0x70] sm:$0xff]  ;;  %v64_v23 = vld [vmem:[#allocation5 + $0x78] sm:$0xff] }
  0x2c   :  { %v305_v21 = vpack.c.bf16 %v62_v20, %v61_v19  ;;  %v309_v24 = vpack.c.bf16 %v64_v23, %v63_v22  ;;  %v69_v25 = vld [vmem:[#allocation2 + $0x8] sm:$0xff]  ;;  %v225_v26 = vld [vmem:[%s489_s2] ss:$0 sm:$0xff] }
  0x2d   :  { %v226_v51 = vld [vmem:[%s490_s3] ss:$0 sm:$0xff]  ;;  %s402_s3 = smov [#allocation7]  }
  0x2e   :  { %288 = vmatpush3.bf16.msra.mxu0 %v285_v5  ;;  %v227_v53 = vld [vmem:[%s491_s4] ss:$0 sm:$0xff]  ;;  %s212_s22 = sshll.u32 %s402_s3, 4  ;;  %s213_s22 = int_to_ptr.vmem [resolvable:$true] %s212_s22 }
  0x2f   :  { %290 = vmatprep.subr.bf16.mxu0 %v289_v8  ;;  %s370_s4 = scalar_lea.vmem %s213_s22, 256  ;;  %p375_p3 = scmp.lt.s32.totalorder %s213_s22, %s213_s22 }
  0x30   :  { %p371_p2 = scmp.ne.s32.totalorder %s213_s22, %s370_s4  ;;  %p376_p4 = scmp.lt.s32.totalorder %s370_s4, %s370_s4 }
  0x32   :  { %292 = vmatpush3.bf16.msra.mxu0 %v289_v8  ;;  %p377_p5 = por %p376_p4, %p375_p3 }
  0x33   :  { %294 = vmatprep.subr.bf16.mxu0 %v293_v12 }
  0x34   :  { %p378_p6 = pnand %p377_p5, %p371_p2 }
  0x36   :  { %296 = vmatpush3.bf16.msra.mxu0 %v293_v12 }
  0x37   :  { %298 = vmatprep.subr.bf16.mxu0 %v297_v15 }
  0x3a   :  { %300 = vmatpush3.bf16.msra.mxu0 %v297_v15 }
  0x3b   :  { %302 = vmatprep.subr.bf16.mxu0 %v301_v18 }
  0x3e   :  { %304 = vmatpush3.bf16.msra.mxu0 %v301_v18 }
  0x3f   :  { %306 = vmatprep.subr.bf16.mxu0 %v305_v21 }
  0x42   :  { %308 = vmatpush3.bf16.msra.mxu0 %v305_v21 }
  0x43   :  { %310 = vmatprep.subr.bf16.mxu0 %v309_v24 }
  0x46   :  { %312 = vmatpush3.bf16.msra.mxu0 %v309_v24 }
  0x49   :  { %279 = vmatmul.mubr.f32.vlgmr.msra.gmra.mrb[0].mxu0 %v69_v25 }
 0x11c   :  { %v280_v27 = vpop.f32.mrb[0].mxu0 }
 0x11d   :  { %v142_v28 = vpop.f32.mrb[1].mxu0  ;;  %v148_v30 = vadd.f32 %v280_v27, %v225_v26 }
 0x11e   :  { %v143_v29 = vadd.f32 %v225_v26, %v142_v28 }
 0x11f   :  { %v156_v32 = vmul.f32 %v148_v30, %v148_v30 }
 0x120   :  { %151 = vadd.xlane.f32.xlu0 %v143_v29  ;;  %v155_v31 = vmul.f32 %v143_v29, %v143_v29 }
 0x122   :  { %157 = vadd.xlane.f32.xlu1 %v155_v31 }
 0x124   :  { %153 = vadd.xlane.f32.xlu0 %v148_v30 }
 0x126   :  { %159 = vadd.xlane.f32.xlu1 %v156_v32 }
 0x1ad   :  { %v152_v33 = vpop.xlane.xlu0 %151 }
 0x1ae   :  { %v161_v34 = vmul.f32 0.03125, %v152_v33 }
 0x1af   :  { %v158_v35 = vpop.xlane.xlu1 %157 }
 0x1b0   :  { %v165_v36 = vmul.f32 %v161_v34, %v161_v34  ;;  %v163_v37 = vmul.f32 0.03125, %v158_v35  ;;  %v175_v49 = vsub.f32 %v143_v29, %v161_v34 }
 0x1b1   :  { %v154_v38 = vpop.xlane.xlu0 %153 }
 0x1b2   :  { %v167_v39 = vsub.f32 %v163_v37, %v165_v36  ;;  %v162_v40 = vmul.f32 0.03125, %v154_v38 }
 0x1b3   :  { %v160_v41 = vpop.xlane.xlu1 %159 }
 0x1b4   :  { %v169_v42 = vmax.f32 %v167_v39, 0.0  ;;  %v166_v43 = vmul.f32 %v162_v40, %v162_v40  ;;  %v164_v44 = vmul.f32 0.03125, %v160_v41  ;;  %v176_v54 = vsub.f32 %v148_v30, %v162_v40 }
 0x1b6   :  { %v171_v45 = vadd.f32 1e-05, %v169_v42  ;;  %v168_v46 = vsub.f32 %v164_v44, %v166_v43 }
 0x1b8   :  { %318 = vrsqrt.f32 %v171_v45  ;;  %v170_v47 = vmax.f32 %v168_v46, 0.0 }
 0x1ba   :  { %v172_v48 = vadd.f32 1e-05, %v170_v47 }
 0x1bc   :  { %320 = vrsqrt.f32 %v172_v48 }
 0x1c2   :  { %v319_v50 = vpop.eup %318 }
 0x1c3   :  { %v177_v52 = vmul.f32 %v319_v50, %v175_v49 }
 0x1c5   :  { %v185_v55 = vmul.f32 %v226_v51, %v177_v52 }
 0x1c6   :  { %v321_v56 = vpop.eup %320 }
 0x1c7   :  { %v178_v57 = vmul.f32 %v321_v56, %v176_v54  ;;  %v193_v58 = vadd.f32 %v227_v53, %v185_v55 }
 0x1c9   :  { %v186_v59 = vmul.f32 %v226_v51, %v178_v57  ;;  %v197_v60 = vmul.f32 0.70710677, %v193_v58  ;;  %v195_v0 = vmul.f32 0.5, %v193_v58 }
 0x1cb   :  { %v194_v61 = vadd.f32 %v227_v53, %v186_v59  ;;  %322 = verf.f32 %v197_v60 }
 0x1cd   :  { %v198_v62 = vmul.f32 0.70710677, %v194_v61  ;;  %v196_v4 = vmul.f32 0.5, %v194_v61 }
 0x1cf   :  { %324 = verf.f32 %v198_v62 }
 0x1d5   :  { %v323_v63 = vpop.eup %322 }
 0x1d6   :  { %v201_v1 = vadd.f32 1.0, %v323_v63 }
 0x1d8   :  { %v203_v2 = vmul.f32 %v201_v1, %v195_v0 }
 0x1d9   :  { %v325_v3 = vpop.eup %324 }
 0x1da   :  { %v202_v5 = vadd.f32 1.0, %v325_v3  ;;  %205 = vst [vmem:[#allocation7] sm:$0xff] %v203_v2 }
 0x1dc   :  { %v204_v6 = vmul.f32 %v202_v5, %v196_v4 }
 0x1de   :  { %206 = vst [vmem:[#allocation7 + $0x8] sm:$0xff] %v204_v6 }
 0x1df   :  { %381 = shalt.err (!%p378_p6)
}
 0x1e0   :  { %s382_s25 = scalar_lea.hbm %s492_s5, 256 }
 0x1e1   :  { %p383_p7 = scmp.ne.s32.totalorder %s492_s5, %s382_s25  ;;  %p386_p8 = scmp.lt.u32.totalorder %s382_s25, %s492_s5 }
 0x1e3   :  { %p388_p9 = pnand %p386_p8, %p383_p7 }
 0x1e5   :  { %391 = shalt.err (!%p388_p9)
}
 0x1e6   :  { %218 = dma.vmem_to_hbm [thread:$0]  %s213_s22, 256, %s492_s5, [#allocation4], %s399_s28, %s399_s28, %s400_s29  }
 0x1e7   :  { %396 = dma.done.wait [#allocation4], 256  }
 0x1e8   :  { %397 = vsyncadd [#allocation4], 4294967040 }
 0x1e9   :  { %222 = vsyncpa [#allocation3], 1 }
 0x1ea   :  { %223 = vsyncpa [#allocation6], 1 }
 0x1eb   :  { %224 = vsyncpa [#allocation4], 1 }

</bundles_post_ra>
